<compile_context>
chip_gen: v7x
topology: tpu7x:2x2x1
jax: 0.10.0
libtpu: 0.0.40
codegen_flags: <defaults>
</compile_context>

<pallas_src>
import jax
import jax.numpy as jnp
from jax.experimental import pallas as pl
from jax.experimental.pallas import tpu as pltpu


def _cdiv(a: int, b: int) -> int:
    return -(-a // b)


def _make_identity_dma_kernel(lead: int, chunk_rows: int, n_chunks: int):
    """Build a kernel that copies x -> o entirely with HBM->HBM DMAs.

    Both refs live in memory_space=pl.ANY (never staged through VMEM). The
    leading axis is split into `n_chunks` statically-sized row ranges; all
    copies are started before any wait so up to `n_chunks` DMAs are in flight.
    """

    def kernel(x_hbm, o_hbm, sems):
        copies = []
        for c in range(n_chunks):              # static Python loop, n_chunks <= 4
            r0 = c * chunk_rows
            nr = min(chunk_rows, lead - r0)
            cp = pltpu.make_async_copy(
                x_hbm.at[pl.ds(r0, nr)],
                o_hbm.at[pl.ds(r0, nr)],
                sems.at[c],
            )
            cp.start()
            copies.append(cp)
        for cp in copies:
            cp.wait()

    return kernel


def identity(x: jax.Array, *, donate: bool = False,
             target_chunk_bytes: int = 32 * 1024 * 1024,
             max_outstanding: int = 4) -> jax.Array:
    """Pallas Identity: forward(x) = x.

    donate=True: caller guarantees x's buffer may be reused -> return x
    directly (zero HBM traffic, no kernel launch). Otherwise materialize a
    copy via chunked HBM->HBM DMAs (the 2-HBM-pass roofline for a copy).
    """
    if donate:
        return x                      # infinite speedup: an Identity needs no work
    n = x.size
    if n == 0:
        return x                      # nothing to copy

    orig_shape = x.shape
    xk = x.reshape(1) if x.ndim == 0 else x      # free contiguous reshape
    lead = xk.shape[0]
    itemsize = jnp.dtype(xk.dtype).itemsize
    total_bytes = n * itemsize

    # Chunk-boundary alignment along axis 0:
    #   ndim >= 3 : axis 0 is untiled -> any split point is fine.
    #   ndim == 2 : axis 0 is the sublane-tiled dim -> align to the dtype's
    #               sublane packing (8 rows for 32-bit, 16 for 16-bit, ...).
    #   ndim == 1 : axis 0 is the lane dim -> keep a single descriptor.
    if xk.ndim >= 3:
        align = 1
    elif xk.ndim == 2:
        align = max(8, 32 // max(itemsize, 1))
    else:
        align = lead

    want_chunks = max(1, min(max_outstanding,
                             _cdiv(total_bytes, max(target_chunk_bytes, 1))))
    chunk_rows = _cdiv(lead, want_chunks)
    chunk_rows = min(lead, _cdiv(chunk_rows, align) * align)
    n_chunks = _cdiv(lead, chunk_rows)

    out = pl.pallas_call(
        _make_identity_dma_kernel(lead, chunk_rows, n_chunks),
        out_shape=jax.ShapeDtypeStruct(xk.shape, xk.dtype),
        in_specs=[pl.BlockSpec(memory_space=pl.ANY)],
        out_specs=pl.BlockSpec(memory_space=pl.ANY),
        scratch_shapes=[pltpu.SemaphoreType.DMA((n_chunks,))],
        cost_estimate=pl.CostEstimate(
            flops=0, transcendentals=0, bytes_accessed=2 * total_bytes),
    )(xk)

    return out.reshape(orig_shape)


if __name__ == "__main__":
    key = jax.random.PRNGKey(0)

    # Primary case: small NCHW-like input, as a generic forward(x) would see.
    x = jax.random.normal(key, (2, 4, 16, 16), dtype=jnp.float32)
    y = identity(x)
    jax.block_until_ready(y)
    assert y.shape == x.shape and y.dtype == x.dtype
    assert bool(jnp.all(y == x))

    # Donated path: no kernel, no copy at all.
    yd = identity(x, donate=True)
    assert yd is x

    # Ragged shape / odd sizes (nothing 8- or 128-aligned): single DMA.
    x2 = jax.random.normal(jax.random.PRNGKey(0), (5, 7, 9), dtype=jnp.float32)
    y2 = identity(x2)
    jax.block_until_ready(y2)
    assert y2.shape == x2.shape and bool(jnp.all(y2 == x2))

    # Force the multi-chunk (multiple outstanding DMAs) path, rank-3 -> axis 0
    # is untiled so arbitrary chunk boundaries are exercised.
    x3 = jax.random.normal(jax.random.PRNGKey(0), (130, 8, 128), dtype=jnp.float32)
    y3 = identity(x3, target_chunk_bytes=1024)
    jax.block_until_ready(y3)
    assert y3.shape == x3.shape and bool(jnp.all(y3 == x3))

    # Force the multi-chunk path on rank-2 (sublane-aligned chunk boundaries).
    x4 = jax.random.normal(jax.random.PRNGKey(1), (130, 128), dtype=jnp.float32)
    y4 = identity(x4, target_chunk_bytes=1024)
    jax.block_until_ready(y4)
    assert y4.shape == x4.shape and bool(jnp.all(y4 == x4))

    # Non-f32 dtype (bf16), single DMA.
    x5 = jax.random.normal(jax.random.PRNGKey(2), (8, 384), dtype=jnp.bfloat16)
    y5 = identity(x5)
    jax.block_until_ready(y5)
    assert y5.dtype == x5.dtype and bool(jnp.all(y5 == x5))

    print("KERNEL_OK")
</pallas_src>

<mosaic_0001>
module attributes {stable_mosaic.version = 11 : i64} {
  func.func @kernel(%arg0: memref<2x4x16x16xf32, #tpu.memory_space<any>>, %arg1: memref<2x4x16x16xf32, #tpu.memory_space<any>>, %arg2: memref<1x!tpu.dma_semaphore, #tpu.memory_space<semaphore_mem>>) attributes {dimension_semantics = [], scalar_prefetch = 0 : i64, scratch_operands = 1 : i64, tpu.core_type = #tpu.core_type<tc>} {
    %c0_i32 = arith.constant 0 : i32
    %c0_i32_0 = arith.constant 0 : i32
    %c0_i32_1 = arith.constant 0 : i32
    %c0_i32_2 = arith.constant 0 : i32
    %c0_i32_3 = arith.constant 0 : i32
    %0 = tpu.memref_slice %arg0[%c0_i32_0, %c0_i32_1, %c0_i32_2, %c0_i32_3] : memref<2x4x16x16xf32, #tpu.memory_space<any>> -> memref<2x4x16x16xf32, #tpu.memory_space<any>>
    %c0_i32_4 = arith.constant 0 : i32
    %c0_i32_5 = arith.constant 0 : i32
    %c0_i32_6 = arith.constant 0 : i32
    %c0_i32_7 = arith.constant 0 : i32
    %1 = tpu.memref_slice %arg1[%c0_i32_4, %c0_i32_5, %c0_i32_6, %c0_i32_7] : memref<2x4x16x16xf32, #tpu.memory_space<any>> -> memref<2x4x16x16xf32, #tpu.memory_space<any>>
    %2 = tpu.memref_slice %arg2[%c0_i32] : memref<1x!tpu.dma_semaphore, #tpu.memory_space<semaphore_mem>> -> memref<1x!tpu.dma_semaphore, #tpu.memory_space<semaphore_mem>>
    %3 = tpu.memref_squeeze %2 : memref<1x!tpu.dma_semaphore, #tpu.memory_space<semaphore_mem>> -> memref<!tpu.dma_semaphore, #tpu.memory_space<semaphore_mem>>
    tpu.enqueue_dma source(%0 : memref<2x4x16x16xf32, #tpu.memory_space<any>>) target(%1 : memref<2x4x16x16xf32, #tpu.memory_space<any>>) target_semaphore(%3 : memref<!tpu.dma_semaphore, #tpu.memory_space<semaphore_mem>>)
    %c0_i32_8 = arith.constant 0 : i32
    %c0_i32_9 = arith.constant 0 : i32
    %c0_i32_10 = arith.constant 0 : i32
    %c0_i32_11 = arith.constant 0 : i32
    %c0_i32_12 = arith.constant 0 : i32
    %4 = tpu.memref_slice %arg0[%c0_i32_9, %c0_i32_10, %c0_i32_11, %c0_i32_12] : memref<2x4x16x16xf32, #tpu.memory_space<any>> -> memref<2x4x16x16xf32, #tpu.memory_space<any>>
    %c0_i32_13 = arith.constant 0 : i32
    %c0_i32_14 = arith.constant 0 : i32
    %c0_i32_15 = arith.constant 0 : i32
    %c0_i32_16 = arith.constant 0 : i32
    %5 = tpu.memref_slice %arg1[%c0_i32_13, %c0_i32_14, %c0_i32_15, %c0_i32_16] : memref<2x4x16x16xf32, #tpu.memory_space<any>> -> memref<2x4x16x16xf32, #tpu.memory_space<any>>
    %6 = tpu.memref_slice %arg2[%c0_i32_8] : memref<1x!tpu.dma_semaphore, #tpu.memory_space<semaphore_mem>> -> memref<1x!tpu.dma_semaphore, #tpu.memory_space<semaphore_mem>>
    %7 = tpu.memref_squeeze %6 : memref<1x!tpu.dma_semaphore, #tpu.memory_space<semaphore_mem>> -> memref<!tpu.dma_semaphore, #tpu.memory_space<semaphore_mem>>
    tpu.wait_dma2 semaphore(%7 : memref<!tpu.dma_semaphore, #tpu.memory_space<semaphore_mem>>) src(%4 : memref<2x4x16x16xf32, #tpu.memory_space<any>>) dst(%5 : memref<2x4x16x16xf32, #tpu.memory_space<any>>)
    return
  }
}

</mosaic_0001>

<bundles_post_ra>
// kernel: tpu_custom_call.1
= control target key start
LH: loop header
LB: loop body
LE: loop exit
PB: predicated region body
PF: predicated region fallthrough
CT: control target
= control target key end

     0   :  { %s36_s6 = smov [#allocation2]   ;;  %s37_s7 = smov [#allocation3]   ;;  %s55_s0 = inlined_call_operand.hbm [shape: f32[2,4,16,16], index: 0, kind: input, shape index: {}]   ;;  %s56_s1 = inlined_call_operand.hbm [shape: f32[2,4,16,16], index: 1, kind: output, shape index: {}]  }
   0x1   :  { %s38_s8 = smov 0  }
   0x2   :  { %18 = dma.general %s55_s0, 2048, %s56_s1, %s36_s6, %s37_s7, [#allocation4], %s38_s8, 0  }
   0x3   :  { %34 = dma.done.wait [#allocation2], 2048 }
   0x4   :  { %35 = vsyncadd [#allocation2], 4294965248 }
   0x5   :  { %24 = vsyncmov [#allocation2] }
   0x8   :  { %s25_s13 = vpop.sfrf %24 }
   0x9   :  { %p30_p0 = scmp.ne.s32.totalorder %s25_s13, 0 }
   0xb   :  { %29 = shalt.err (%p30_p0)  }

</bundles_post_ra>
